<compile_context>
chip_gen: v5e
topology: v5e:2x2
jax: 0.10.0
libtpu: 0.0.40
codegen_flags: <defaults>
</compile_context>

<pallas_src>
import jax
import jax.numpy as jnp
from jax import lax
from jax.experimental import pallas as pl
from jax.experimental.pallas import tpu as pltpu

_REDUCTION_MODES = ("none", "mean", "sum")
_LANE_CHOICES = (1024, 512, 256, 128)   # prefer lane-dense slabs (unmasked vst)


# ---------------------------------------------------------------------------
# Chip / layout / tiling helpers
# ---------------------------------------------------------------------------
def _chip_config():
    """Generation-aware tiling & parallelism knobs (conservative fallback)."""
    kind = ""
    try:
        kind = jax.devices()[0].device_kind.lower()
    except Exception:
        pass
    if any(v in kind for v in ("v2", "v3", "v4", "v5")):
        # v5e: 16 MiB default scoped VMEM -> keep the whole pipeline <= ~12 MiB.
        return dict(per_tile_bytes=2 << 20, budget_bytes=12 << 20,
                    num_partials=1, vmem_limit_bytes=None)
    if "v6" in kind:
        return dict(per_tile_bytes=4 << 20, budget_bytes=26 << 20,
                    num_partials=1, vmem_limit_bytes=48 << 20)
    if "7" in kind:
        # v7x: 64 MiB physical VMEM per TC, 2 TensorCores -> 2 partial sums.
        # TODO(synk): verify the outer "parallel" axis really shards across both
        # TensorCores (else switch to pltpu.CORE_PARALLEL) and consider
        # pipeline_mode=pl.Buffered(3) on the sum-path inputs.
        return dict(per_tile_bytes=4 << 20, budget_bytes=26 << 20,
                    num_partials=2, vmem_limit_bytes=40 << 20)
    return dict(per_tile_bytes=1 << 20, budget_bytes=12 << 20,
                num_partials=1, vmem_limit_bytes=None)


def _choose_layout(n):
    """Pick (lane_w, rows, needs_pad) so the flat stream views as (rows, lane_w).

    If n divides one of the lane choices the reshape is a free bitcast; otherwise
    fall back to padding to a multiple of 128 (one extra copy; rare for NCHW).
    TODO(synk): dump HLO for non-128-aligned minor dims and, if XLA emits a
    relayout copy, block directly over the native 4-D layout instead.
    """
    for lane_w in _LANE_CHOICES:
        if n % lane_w == 0:
            return lane_w, n // lane_w, False
    lane_w = 128
    return lane_w, pl.cdiv(n, lane_w), True


def _pick_block_rows(rows, lane_w, itemsize, num_bufs, cfg):
    """Largest row-block such that num_bufs double-buffered tiles fit the budget."""
    tile_bytes = min(cfg["per_tile_bytes"],
                     max(1, cfg["budget_bytes"] // (2 * num_bufs)))
    row_align = max(8, 32 // max(1, itemsize))       # f32:8, bf16:16, int8:32
    target_rows = max(row_align, tile_bytes // (lane_w * itemsize))
    br = min(rows, target_rows)
    if br < rows:
        br = max(row_align, (br // row_align) * row_align)
        br = min(br, rows)
    return max(1, br)


# ---------------------------------------------------------------------------
# Kernels
# ---------------------------------------------------------------------------
def _make_sum_kernel(weighted, rows_total, block_rows, acc_rows, inner_steps,
                     mask_tail):
    """Sum-reduction kernel: grid = (num_partials, inner_steps)."""
    folds = block_rows // acc_rows

    def fold_add(acc_ref, x):
        if folds > 1:
            # Sublane-split reshape is a view; axis-0 sum is pure VPU adds.
            acc_ref[...] += x.reshape(folds, acc_rows, x.shape[-1]).sum(axis=0)
        else:
            acc_ref[...] += x

    def body(pred_ref, target_ref, weight_ref, out_d_ref, out_w_ref,
             acc_d, acc_w):
        j = pl.program_id(1)

        @pl.when(j == 0)
        def _():
            acc_d[...] = jnp.zeros_like(acc_d)
            if weighted:
                acc_w[...] = jnp.zeros_like(acc_w)

        d = jnp.abs(pred_ref[...].astype(jnp.float32)
                    - target_ref[...].astype(jnp.float32))
        w = None
        if weighted:
            w = weight_ref[...].astype(jnp.float32)
            d = d * w
        if mask_tail:
            # Mask rows past the logical end (partial boundary block / overshoot).
            g = pl.program_id(0) * inner_steps + j
            row_ids = g * block_rows + lax.broadcasted_iota(
                jnp.int32, (block_rows, 1), 0)
            valid = row_ids < rows_total
            d = jnp.where(valid, d, 0.0)
            if weighted:
                w = jnp.where(valid, w, 0.0)

        fold_add(acc_d, d)
        if weighted:
            fold_add(acc_w, w)            # fused weight-sum (mean denominator)

        @pl.when(j == pl.num_programs(1) - 1)
        def _():
            out_d_ref[...] = jnp.full(out_d_ref.shape, jnp.sum(acc_d[...]),
                                      jnp.float32)
            if weighted:
                out_w_ref[...] = jnp.full(out_w_ref.shape, jnp.sum(acc_w[...]),
                                          jnp.float32)

    if weighted:
        def kernel(p, t, w, od, ow, ad, aw):
            body(p, t, w, od, ow, ad, aw)
    else:
        def kernel(p, t, od, ad):
            body(p, t, None, od, None, ad, None)
    return kernel


def _make_none_kernel(weighted, loss_weight):
    """Elementwise |pred-target| (* weight) * loss_weight, in native dtype."""
    lw = None if float(loss_weight) == 1.0 else float(loss_weight)

    def compute(pred_ref, target_ref, weight_ref, out_ref):
        # Native-dtype math (no f32 upcast). NOTE: loss_weight is applied in the
        # input dtype (e.g. bf16) -> tiny rounding vs f32 scaling (documented).
        d = jnp.abs(pred_ref[...] - target_ref[...])
        if weighted:
            d = d * weight_ref[...]
        if lw is not None:
            d = d * jnp.asarray(lw, d.dtype)
        out_ref[...] = d.astype(out_ref.dtype)

    if weighted:
        def kernel(p, t, w, o):
            compute(p, t, w, o)
    else:
        def kernel(p, t, o):
            compute(p, t, None, o)
    return kernel


# ---------------------------------------------------------------------------
# pallas_call wrappers
# ---------------------------------------------------------------------------
def _run_sum(pred2d, target2d, weight2d, rows, lane_w, block_rows,
             num_partials, cfg):
    nblocks = pl.cdiv(rows, block_rows)
    num_partials = num_partials if nblocks >= 2 else 1
    inner = pl.cdiv(nblocks, num_partials)
    overshoot = (num_partials * inner) > nblocks
    mask_tail = (num_partials * inner * block_rows) != rows
    acc_rows = 8 if (block_rows >= 8 and block_rows % 8 == 0) else block_rows

    def in_map(p, j):
        g = p * inner + j
        if overshoot:
            g = jnp.minimum(g, nblocks - 1)   # clamp DMA; masked in-kernel
        return (g, 0)

    tile_spec = pl.BlockSpec((block_rows, lane_w), in_map)
    out_spec = pl.BlockSpec((8, 128), lambda p, j: (p, 0))

    weighted = weight2d is not None
    ins = (pred2d, target2d) + ((weight2d,) if weighted else ())
    kernel = _make_sum_kernel(weighted, rows, block_rows, acc_rows, inner,
                              mask_tail)

    out_sds = jax.ShapeDtypeStruct((num_partials * 8, 128), jnp.float32)
    scratch = [pltpu.VMEM((acc_rows, lane_w), jnp.float32)]
    if weighted:
        out_shape = (out_sds, out_sds)
        out_specs = (out_spec, out_spec)
        scratch.append(pltpu.VMEM((acc_rows, lane_w), jnp.float32))
    else:
        out_shape = out_sds
        out_specs = out_spec

    in_bytes = sum(int(x.size) * x.dtype.itemsize for x in ins)
    out_bytes = num_partials * 8 * 128 * 4 * (2 if weighted else 1)
    cost = pl.CostEstimate(flops=(3 if weighted else 2) * rows * lane_w,
                           transcendentals=0,
                           bytes_accessed=in_bytes + out_bytes)

    out = pl.pallas_call(
        kernel,
        out_shape=out_shape,
        grid=(num_partials, inner),
        in_specs=[tile_spec] * len(ins),
        out_specs=out_specs,
        scratch_shapes=scratch,
        compiler_params=pltpu.CompilerParams(
            dimension_semantics=("parallel", "arbitrary"),
            vmem_limit_bytes=cfg["vmem_limit_bytes"]),
        cost_estimate=cost,
    )(*ins)

    # Each (8,128) tile is a broadcast of that partial's scalar sum.
    if weighted:
        out_d, out_w = out
        total_d = jnp.sum(out_d.reshape(num_partials, 8, 128)[:, 0, 0])
        total_w = jnp.sum(out_w.reshape(num_partials, 8, 128)[:, 0, 0])
        return total_d, total_w
    total_d = jnp.sum(out.reshape(num_partials, 8, 128)[:, 0, 0])
    return total_d, None


def _run_none(pred2d, target2d, weight2d, rows, lane_w, block_rows,
              loss_weight, out_dtype, cfg):
    nblocks = pl.cdiv(rows, block_rows)
    tile_spec = pl.BlockSpec((block_rows, lane_w), lambda i: (i, 0))
    weighted = weight2d is not None
    ins = (pred2d, target2d) + ((weight2d,) if weighted else ())
    kernel = _make_none_kernel(weighted, loss_weight)

    n_elems = rows * lane_w
    in_bytes = sum(int(x.size) * x.dtype.itemsize for x in ins)
    out_bytes = n_elems * jnp.dtype(out_dtype).itemsize
    cost = pl.CostEstimate(flops=(3 if weighted else 2) * n_elems,
                           transcendentals=0,
                           bytes_accessed=in_bytes + out_bytes)

    return pl.pallas_call(
        kernel,
        out_shape=jax.ShapeDtypeStruct((rows, lane_w), out_dtype),
        grid=(nblocks,),
        in_specs=[tile_spec] * len(ins),
        out_specs=tile_spec,
        compiler_params=pltpu.CompilerParams(
            dimension_semantics=("parallel",),
            vmem_limit_bytes=cfg["vmem_limit_bytes"]),
        cost_estimate=cost,
    )(*ins)


# ---------------------------------------------------------------------------
# Module-equivalent forward
# ---------------------------------------------------------------------------
def l1_loss_forward(pred, target, weight=None, *, loss_weight=1.0,
                    reduction="mean", _force_partials=None,
                    _force_block_rows=None):
    """Equivalent of basicsr L1Loss(loss_weight, reduction)(pred, target, weight)."""
    if reduction not in _REDUCTION_MODES:
        raise ValueError(f"Unsupported reduction mode: {reduction}. "
                         f"Supported ones are: {_REDUCTION_MODES}")
    assert pred.shape == target.shape

    if weight is not None and weight.shape != pred.shape:
        # basicsr allows a singleton channel dim; broadcasting also gives the
        # correct weight.sum()*C mean denominator.
        weight = jnp.broadcast_to(weight, pred.shape)

    cfg = _chip_config()
    n = int(pred.size)
    lane_w, rows, needs_pad = _choose_layout(n)
    itemsize = jnp.dtype(pred.dtype).itemsize
    weighted = weight is not None

    def to2d(x):
        flat = x.reshape(-1)                       # free bitcast reshape
        if needs_pad:                              # rare fallback (one copy)
            flat = jnp.pad(flat, (0, rows * lane_w - n))
        return flat.reshape(rows, lane_w)

    pred2d, target2d = to2d(pred), to2d(target)
    weight2d = to2d(weight) if weighted else None

    if reduction == "none":
        num_bufs = (3 if weighted else 2) + 1      # inputs + output, double-buffered
        block_rows = _force_block_rows or _pick_block_rows(
            rows, lane_w, itemsize, num_bufs, cfg)
        out2d = _run_none(pred2d, target2d, weight2d, rows, lane_w,
                          block_rows, loss_weight, pred.dtype, cfg)
        out_flat = out2d.reshape(-1)
        if needs_pad:
            out_flat = out_flat[:n]
        return out_flat.reshape(pred.shape)

    num_bufs = 3 if weighted else 2                # outputs/acc are tiny
    block_rows = _force_block_rows or _pick_block_rows(
        rows, lane_w, itemsize, num_bufs, cfg)
    num_partials = _force_partials or cfg["num_partials"]

    total_d, total_w = _run_sum(pred2d, target2d, weight2d, rows, lane_w,
                                block_rows, num_partials, cfg)

    if reduction == "sum":
        return loss_weight * total_d

    # reduction == 'mean'  (basicsr weight_reduce_loss semantics)
    if weight is None:
        denom = jnp.float32(n)
    else:
        denom = total_w        # fused in-kernel weight sum (no extra HBM pass)
    return loss_weight * total_d / denom


# ---------------------------------------------------------------------------
# Self-test
# ---------------------------------------------------------------------------
if __name__ == "__main__":
    key = jax.random.PRNGKey(0)
    k1, k2, k3 = jax.random.split(key, 3)

    # primary small NCHW case
    N, C, H, W = 2, 4, 16, 16
    pred = jax.random.normal(k1, (N, C, H, W), dtype=jnp.float32)
    target = jax.random.normal(k2, (N, C, H, W), dtype=jnp.float32)

    loss = jax.block_until_ready(
        l1_loss_forward(pred, target, loss_weight=1.0, reduction="mean"))
    ref = jnp.mean(jnp.abs(pred - target))
    assert jnp.allclose(loss, ref, rtol=1e-5, atol=1e-6), (loss, ref)

    # 'none' reduction with fused loss_weight
    lw = 0.5
    loss_none = jax.block_until_ready(
        l1_loss_forward(pred, target, loss_weight=lw, reduction="none"))
    assert loss_none.shape == (N, C, H, W)
    assert jnp.allclose(loss_none, lw * jnp.abs(pred - target),
                        rtol=1e-5, atol=1e-6)

    # weighted 'sum'
    weight = jax.random.uniform(k3, (N, C, H, W), dtype=jnp.float32)
    loss_sum = jax.block_until_ready(
        l1_loss_forward(pred, target, weight=weight, reduction="sum"))
    ref_sum = jnp.sum(jnp.abs(pred - target) * weight)
    assert jnp.allclose(loss_sum, ref_sum, rtol=1e-5, atol=1e-4), (loss_sum, ref_sum)

    # weighted 'mean' (exercises the fused in-kernel weight-sum denominator)
    loss_wmean = jax.block_until_ready(
        l1_loss_forward(pred, target, weight=weight, reduction="mean"))
    ref_wmean = jnp.sum(jnp.abs(pred - target) * weight) / jnp.sum(weight)
    assert jnp.allclose(loss_wmean, ref_wmean, rtol=1e-5, atol=1e-5)

    # singleton-channel weight (basicsr: denom = weight.sum() * C)
    w1 = jax.random.uniform(k3, (N, 1, H, W), dtype=jnp.float32)
    loss_w1 = jax.block_until_ready(
        l1_loss_forward(pred, target, weight=w1, reduction="mean"))
    ref_w1 = jnp.sum(jnp.abs(pred - target) * w1) / (jnp.sum(w1) * C)
    assert jnp.allclose(loss_w1, ref_w1, rtol=1e-5, atol=1e-5)

    # bf16 inputs (dtype-aware tiling; f32 accumulation inside the kernel)
    pb, tb = pred.astype(jnp.bfloat16), target.astype(jnp.bfloat16)
    loss_bf = jax.block_until_ready(l1_loss_forward(pb, tb, reduction="mean"))
    ref_bf = jnp.mean(jnp.abs(pb.astype(jnp.float32) - tb.astype(jnp.float32)))
    assert jnp.allclose(loss_bf, ref_bf, rtol=1e-5, atol=1e-5)

    # natural multi-block grid + row-tail masking (260 rows of 1024 lanes)
    shape2 = (2, 8, 130, 128)
    p2 = jax.random.normal(k1, shape2, dtype=jnp.float32)
    t2 = jax.random.normal(k2, shape2, dtype=jnp.float32)
    loss2 = jax.block_until_ready(l1_loss_forward(p2, t2, reduction="mean"))
    ref2 = jnp.mean(jnp.abs(p2 - t2))
    assert jnp.allclose(loss2, ref2, rtol=1e-5, atol=1e-5), (loss2, ref2)

    # forced small blocks: odd #blocks + tail masking + 2 partials + overshoot
    # clamp, exercised regardless of which TPU generation runs the test.
    shape3 = (1, 3, 13, 128)       # 39 rows of 128 lanes, 5 blocks of 8 rows
    p3 = jax.random.normal(k1, shape3, dtype=jnp.float32)
    t3 = jax.random.normal(k2, shape3, dtype=jnp.float32)
    w3 = jax.random.uniform(k3, shape3, dtype=jnp.float32)
    loss3 = jax.block_until_ready(
        l1_loss_forward(p3, t3, weight=w3, reduction="mean",
                        _force_block_rows=8, _force_partials=2))
    ref3 = jnp.sum(jnp.abs(p3 - t3) * w3) / jnp.sum(w3)
    assert jnp.allclose(loss3, ref3, rtol=1e-5, atol=1e-5), (loss3, ref3)

    print("KERNEL_OK")
</pallas_src>

<mosaic_0001>
module attributes {stable_mosaic.version = 11 : i64} {
  func.func @kernel(%arg0: i32, %arg1: i32, %arg2: memref<2x1024xf32, #tpu.memory_space<vmem>>, %arg3: memref<2x1024xf32, #tpu.memory_space<vmem>>, %arg4: memref<8x128xf32, #tpu.memory_space<vmem>>, %arg5: memref<2x1024xf32, #tpu.memory_space<vmem>>) attributes {dimension_semantics = [#tpu.dimension_semantics<parallel>, #tpu.dimension_semantics<arbitrary>], iteration_bounds = array<i64: 1, 1>, scalar_prefetch = 0 : i64, scratch_operands = 1 : i64, tpu.core_type = #tpu.core_type<tc>, window_params = [{transform_indices = @transform_0, window_bounds = array<i64: 2, 1024>}, {transform_indices = @transform_1, window_bounds = array<i64: 2, 1024>}, {transform_indices = @transform_2, window_bounds = array<i64: 8, 128>}]} {
    %c0_i32 = arith.constant 0 : i32
    %0 = arith.cmpi eq, %arg1, %c0_i32 : i32
    %1 = arith.extui %0 : i1 to i32
    %c0_i32_0 = arith.constant 0 : i32
    %2 = arith.cmpi ne, %1, %c0_i32_0 : i32
    scf.if %2 {
      %cst = arith.constant 0.000000e+00 : f32
      %13 = vector.broadcast %cst : f32 to vector<2x1024xf32>
      %c0_10 = arith.constant 0 : index
      %c0_11 = arith.constant 0 : index
      %14 = vector.load %arg5[%c0_10, %c0_11] : memref<2x1024xf32, #tpu.memory_space<vmem>>, vector<2x1024xf32>
      tpu.vector_store %arg5[%c0_10, %c0_11], %13 {strides = array<i32>} : memref<2x1024xf32, #tpu.memory_space<vmem>>, vector<2x1024xf32>,
    } else {
    }
    %c0 = arith.constant 0 : index
    %c0_1 = arith.constant 0 : index
    %3 = vector.load %arg2[%c0, %c0_1] : memref<2x1024xf32, #tpu.memory_space<vmem>>, vector<2x1024xf32>
    %c0_2 = arith.constant 0 : index
    %c0_3 = arith.constant 0 : index
    %4 = vector.load %arg3[%c0_2, %c0_3] : memref<2x1024xf32, #tpu.memory_space<vmem>>, vector<2x1024xf32>
    %5 = arith.subf %3, %4 : vector<2x1024xf32>
    %6 = math.absf %5 : vector<2x1024xf32>
    %c0_4 = arith.constant 0 : index
    %c0_5 = arith.constant 0 : index
    %7 = vector.load %arg5[%c0_4, %c0_5] : memref<2x1024xf32, #tpu.memory_space<vmem>>, vector<2x1024xf32>
    %8 = arith.addf %7, %6 : vector<2x1024xf32>
    %c0_6 = arith.constant 0 : index
    %c0_7 = arith.constant 0 : index
    %9 = vector.load %arg5[%c0_6, %c0_7] : memref<2x1024xf32, #tpu.memory_space<vmem>>, vector<2x1024xf32>
    tpu.vector_store %arg5[%c0_6, %c0_7], %8 {strides = array<i32>} : memref<2x1024xf32, #tpu.memory_space<vmem>>, vector<2x1024xf32>,
    %c0_i32_8 = arith.constant 0 : i32
    %10 = arith.cmpi eq, %arg1, %c0_i32_8 : i32
    %11 = arith.extui %10 : i1 to i32
    %c0_i32_9 = arith.constant 0 : i32
    %12 = arith.cmpi ne, %11, %c0_i32_9 : i32
    scf.if %12 {
      %c0_10 = arith.constant 0 : index
      %c0_11 = arith.constant 0 : index
      %13 = vector.load %arg5[%c0_10, %c0_11] : memref<2x1024xf32, #tpu.memory_space<vmem>>, vector<2x1024xf32>
      %14 = vector.shape_cast %13 : vector<2x1024xf32> to vector<1x2x1024xf32>
      %cst = arith.constant dense<0.000000e+00> : vector<1xf32>
      %15 = vector.multi_reduction <add>, %14, %cst [1, 2] : vector<1x2x1024xf32> to vector<1xf32>
      %16 = vector.shape_cast %15 : vector<1xf32> to vector<1x1x1xf32>
      %17 = vector.extract %16[0, 0, 0] : f32 from vector<1x1x1xf32>
      %18 = vector.broadcast %17 : f32 to vector<8x128xf32>
      %c0_12 = arith.constant 0 : index
      %c0_13 = arith.constant 0 : index
      %19 = vector.load %arg4[%c0_12, %c0_13] : memref<8x128xf32, #tpu.memory_space<vmem>>, vector<8x128xf32>
      tpu.vector_store %arg4[%c0_12, %c0_13], %18 {strides = array<i32>} : memref<8x128xf32, #tpu.memory_space<vmem>>, vector<8x128xf32>,
    } else {
    }
    return
  }
  func.func @transform_0(%arg0: i32, %arg1: i32) -> (i32, i32) {
    %c1_i32 = arith.constant 1 : i32
    %0 = arith.muli %arg0, %c1_i32 : i32
    %1 = arith.addi %0, %arg1 : i32
    %c0_i32 = arith.constant 0 : i32
    %c0_i32_0 = arith.constant 0 : i32
    return %1, %c0_i32 : i32, i32
  }
  func.func @transform_1(%arg0: i32, %arg1: i32) -> (i32, i32) {
    %c1_i32 = arith.constant 1 : i32
    %0 = arith.muli %arg0, %c1_i32 : i32
    %1 = arith.addi %0, %arg1 : i32
    %c0_i32 = arith.constant 0 : i32
    %c0_i32_0 = arith.constant 0 : i32
    return %1, %c0_i32 : i32, i32
  }
  func.func @transform_2(%arg0: i32, %arg1: i32) -> (i32, i32) {
    %c0_i32 = arith.constant 0 : i32
    %c0_i32_0 = arith.constant 0 : i32
    return %arg0, %c0_i32 : i32, i32
  }
}

</mosaic_0001>

<bundles_post_ra>
// kernel: tpu_custom_call.1
= control target key start
LH: loop header
LB: loop body
LE: loop exit
PB: predicated region body
PF: predicated region fallthrough
CT: control target
= control target key end

     0   :  { %7 = vsyncpa [#allocation4], 0  ;;  %s259_s0 = inlined_call_operand.hbm [shape: f32[2,1024], index: 0, kind: input, shape index: {}]   ;;  %s260_s1 = inlined_call_operand.hbm [shape: f32[2,1024], index: 1, kind: input, shape index: {}]   ;;  %s261_s2 = inlined_call_operand.hbm [shape: f32[8,128], index: 2, kind: output, shape index: {}]  }
   0x1   :  { %8 = vsyncpa [#allocation7], 0 }
   0x2   :  { %9 = vsyncpa [#allocation5], 0  ;;  %s19_s11 = sshll.u32 %s259_s0, 4  ;;  %s224_s12 = smov [#allocation3]   ;;  %s20_s11 = int_to_ptr.hbm [resolvable:$true] %s19_s11 }
   0x3   :  { %s21_s13 = sshll.u32 %s224_s12, 4  ;;  %s34_s16 = sshll.u32 %s260_s1, 4  ;;  %s22_s13 = int_to_ptr.vmem [resolvable:$true] %s21_s13  ;;  %s35_s16 = int_to_ptr.hbm [resolvable:$true] %s34_s16 }
   0x4   :  { %24 = dma.hbm_to_vmem [thread:$0]  %s20_s11, 256, %s22_s13, [#allocation4]  }
   0x5   :  { %s225_s17 = smov [#allocation6]  }
   0x6   :  { %s36_s18 = sshll.u32 %s225_s17, 4  ;;  %s37_s18 = int_to_ptr.vmem [resolvable:$true] %s36_s18 }
   0x7   :  { %39 = dma.hbm_to_vmem [thread:$0]  %s35_s16, 256, %s37_s18, [#allocation7]  }
   0x8   :  { %218 = dma.done.wait [#allocation4], 256  }
   0x9   :  { %219 = vsyncadd [#allocation4], 4294967040 }
   0xa   :  { %220 = dma.done.wait [#allocation7], 256  }
   0xb   :  { %221 = vsyncadd [#allocation7], 4294967040  ;;  %v56_v0 = vld [vmem:[#allocation3] sm:$0xff]  ;;  %v57_v1 = vld [vmem:[#allocation3 + $0x8] sm:$0xff]  ;;  %vm96_vm0 = vcmask 1041408   ;;  %s226_s0 = smov [#allocation8]  }
   0xc   :  { %v58_v2 = vld [vmem:[#allocation6] sm:$0xff]  ;;  %v59_v3 = vld [vmem:[#allocation6 + $0x8] sm:$0xff]  ;;  %s128_s1 = sshll.u32 %s226_s0, 4  ;;  %s130_s21 = sshll.u32 %s261_s2, 4  ;;  %s129_s1 = int_to_ptr.vmem [resolvable:$true] %s128_s1  ;;  %s131_s21 = int_to_ptr.hbm [resolvable:$true] %s130_s21 }
   0xd   :  { %v60_v4 = vsub.f32 %v56_v0, %v58_v2  ;;  %v61_v5 = vsub.f32 %v57_v1, %v59_v3 }
   0xf   :  { %v62_v6 = vand.u32 2147483647, %v60_v4  ;;  %v63_v7 = vand.u32 2147483647, %v61_v5 }
  0x11   :  { %77 = vst [vmem:[#allocation1] ss:$4 sm:$0xff] %v62_v6 }
  0x12   :  { %79 = vst [vmem:[#allocation1 + $0x20] ss:$4 sm:$0xff] %v63_v7 }
  0x18   :  { %v80_v8 = vld.sshfl [vmem:[#allocation1] sm:$0xff pattern:$0x73625140]  ;;  %v81_v9 = vld.sshfl [vmem:[#allocation1 + $0x8] sm:$0xff pattern:$0x73625140] }
  0x19   :  { %v82_v10 = vld.sshfl [vmem:[#allocation1 + $0x10] sm:$0xff pattern:$0x73625140]  ;;  %v83_v11 = vld.sshfl [vmem:[#allocation1 + $0x18] sm:$0xff pattern:$0x73625140] }
  0x1a   :  { %v97_v12 = vsel %vm96_vm0, %v80_v8, 0.0  ;;  %v98_v13 = vsel %vm96_vm0, %v81_v9, 0.0  ;;  %v100_v14 = vsel %vm96_vm0, %v82_v10, 0.0  ;;  %v84_v15 = vld.sshfl [vmem:[#allocation1 + $0x20] sm:$0xff pattern:$0x73625140] }
  0x1b   :  { %v99_v16 = vadd.f32 %v98_v13, %v97_v12  ;;  %v102_v17 = vsel %vm96_vm0, %v83_v11, 0.0  ;;  %v85_v18 = vld.sshfl [vmem:[#allocation1 + $0x28] sm:$0xff pattern:$0x73625140]  ;;  %v104_v20 = vsel %vm96_vm0, %v84_v15, 0.0 }
  0x1c   :  { %v86_v21 = vld.sshfl [vmem:[#allocation1 + $0x30] sm:$0xff pattern:$0x73625140]  ;;  %v106_v23 = vsel %vm96_vm0, %v85_v18, 0.0 }
  0x1d   :  { %v101_v19 = vadd.f32 %v100_v14, %v99_v16  ;;  %v87_v24 = vld.sshfl [vmem:[#allocation1 + $0x38] sm:$0xff pattern:$0x73625140]  ;;  %v108_v26 = vsel %vm96_vm0, %v86_v21, 0.0 }
  0x1e   :  { %v110_v28 = vsel %vm96_vm0, %v87_v24, 0.0 }
  0x1f   :  { %v103_v22 = vadd.f32 %v102_v17, %v101_v19 }
  0x21   :  { %v105_v25 = vadd.f32 %v104_v20, %v103_v22 }
  0x23   :  { %v107_v27 = vadd.f32 %v106_v23, %v105_v25 }
  0x25   :  { %v109_v29 = vadd.f32 %v108_v26, %v107_v27 }
  0x27   :  { %v111_v30 = vadd.f32 %v110_v28, %v109_v29 }
  0x29   :  { %112 = vadd.xlane.f32.xlu0 %v111_v30 }
  0x9c   :  { %v113_v31 = vpop.xlane.xlu0 %112 }
  0x9d   :  { %v114_v32 = vrot.slane %v113_v31, 4 }
  0x9f   :  { %v115_v33 = vadd.f32 %v114_v32, %v113_v31 }
  0xa1   :  { %v116_v34 = vrot.slane %v115_v33, 2 }
  0xa3   :  { %v117_v35 = vadd.f32 %v116_v34, %v115_v33 }
  0xa5   :  { %v118_v36 = vrot.slane %v117_v35, 1 }
  0xa7   :  { %v119_v37 = vadd.f32 %v118_v36, %v117_v35 }
  0xa9   :  { %141 = vpush %v119_v37 }
  0xda   :  { %s142_s22 = spop %141 }
  0xdb   :  { %v121_v38 = vstv %s142_s22 }
  0xdc   :  { %122 = vst [vmem:[#allocation8] sm:$0xff] %v121_v38 }
  0xdd   :  { %133 = dma.vmem_to_hbm [thread:$0]  %s129_s1, 128, %s131_s21, [#allocation5]  }
  0xde   :  { %222 = dma.done.wait [#allocation5], 128  }
  0xdf   :  { %223 = vsyncadd [#allocation5], 4294967168 }
  0xe0   :  { %138 = vsyncpa [#allocation4], 1 }
  0xe1   :  { %139 = vsyncpa [#allocation7], 1 }
  0xe2   :  { %140 = vsyncpa [#allocation5], 1 }

</bundles_post_ra>
